<compile_context>
chip_gen: v5e
topology: v5e:2x2
jax: 0.10.0
libtpu: 0.0.40
codegen_flags: <defaults>
</compile_context>

<pallas_src>
import jax
import jax.numpy as jnp
from jax.experimental import pallas as pl
from jax.experimental.pallas import tpu as pltpu


# ~6 MiB per block: in + out, double-buffered -> ~24 MiB VMEM, safe on all gens.
_BLOCK_BUDGET_BYTES = 6 * 1024 * 1024
_VMEM_LIMIT_BYTES = 48 * 1024 * 1024


def _denorm_kernel(x_ref, scale_ref, shift_ref, o_ref):
    # x_ref / o_ref: (ROW_BLK, LANE_BLK) VMEM tiles.
    # scale_ref / shift_ref: (ROW_BLK, 1) VMEM tiles, broadcast over lanes (VPU).
    o_ref[...] = x_ref[...] * scale_ref[...] + shift_ref[...]


def _round_up(a, b):
    return ((a + b - 1) // b) * b


def _pick_blocks(R, L, itemsize):
    """Byte-budget, alignment-aware block sizing.

    Returns (ROW_BLK, LANE_BLK) where ROW_BLK is a multiple of the dtype's
    sublane packing and LANE_BLK is a multiple of 128.  Ragged array edges are
    left to Pallas edge masking (pl.cdiv grid), never to full-extent blocks.
    """
    # Sublane packing: f32 -> 8, bf16/f16 -> 16, int8/fp8 -> 32.
    row_align = {4: 8, 2: 16, 1: 32}.get(itemsize, 8)
    lane_align = 128

    budget_elems = max(_BLOCK_BUDGET_BYTES // itemsize, row_align * lane_align)

    lane_full = _round_up(L, lane_align)   # full rows, 128-aligned (ragged edge masked)
    row_full = _round_up(R, row_align)

    if lane_full * row_align <= budget_elems:
        # Full rows fit the budget: contiguous DMA per block, lane axis never tiled.
        lane_blk = lane_full
    else:
        # Rows too long: tile lanes with the largest 128-multiple that still lets
        # at least one aligned row-group fit the budget.
        lane_blk = (budget_elems // row_align) // lane_align * lane_align
        lane_blk = max(lane_align, min(lane_blk, lane_full))

    # Largest aligned row block that keeps the block within the byte budget.
    row_blk = (budget_elems // lane_blk) // row_align * row_align
    row_blk = max(row_align, min(row_blk, row_full))

    # v7x megacore guard: if everything collapsed into a single grid step but the
    # row dim can be split, halve it so both TensorCores get work.
    if pl.cdiv(R, row_blk) * pl.cdiv(L, lane_blk) == 1 and pl.cdiv(R, row_align) >= 2:
        row_blk = _round_up(pl.cdiv(R, 2), row_align)

    return row_blk, lane_blk


def denormalize(x, mean, std):
    """x: (N, C, H, W).  mean, std: (C,).
    Returns x * std[None, :, None, None] + mean[None, :, None, None]."""
    N, C, H, W = x.shape
    dtype = x.dtype
    itemsize = jnp.dtype(dtype).itemsize

    # Match PyTorch semantics: mean/std are cast to the tensor dtype before mul/add.
    mean = jnp.asarray(mean, dtype=dtype)
    std = jnp.asarray(std, dtype=dtype)
    # TODO(synk): the PyTorch `(std == 0).any()` ValueError is a host-side check with
    # no clean in-kernel equivalent (and guards a division that never happens here).

    R = N * C          # rows: one per (batch, channel)
    L = H * W          # lane-dense spatial dimension
    x2 = x.reshape(R, L)

    # Per-row scale/shift so the kernel never indexes by channel.
    scale = jnp.broadcast_to(std[None, :], (N, C)).reshape(R, 1)
    shift = jnp.broadcast_to(mean[None, :], (N, C)).reshape(R, 1)

    ROW_BLK, LANE_BLK = _pick_blocks(R, L, itemsize)
    grid = (pl.cdiv(R, ROW_BLK), pl.cdiv(L, LANE_BLK))

    out2 = pl.pallas_call(
        _denorm_kernel,
        out_shape=jax.ShapeDtypeStruct((R, L), dtype),
        grid_spec=pl.GridSpec(
            grid=grid,
            in_specs=[
                pl.BlockSpec((ROW_BLK, LANE_BLK), lambda i, j: (i, j)),  # x
                pl.BlockSpec((ROW_BLK, 1), lambda i, j: (i, 0)),          # scale (std)
                pl.BlockSpec((ROW_BLK, 1), lambda i, j: (i, 0)),          # shift (mean)
            ],
            out_specs=pl.BlockSpec((ROW_BLK, LANE_BLK), lambda i, j: (i, j)),
        ),
        compiler_params=pltpu.CompilerParams(
            dimension_semantics=("parallel", "parallel"),
            vmem_limit_bytes=_VMEM_LIMIT_BYTES,
        ),
    )(x2, scale, shift)

    return out2.reshape(N, C, H, W)


if __name__ == "__main__":
    key = jax.random.PRNGKey(0)
    N, C, H, W = 2, 4, 16, 16
    x = jax.random.normal(key, (N, C, H, W), dtype=jnp.float32)

    # Deterministic per-channel mean/std (as in DeNormalize.__init__(mean, std)).
    mean = jnp.array([0.485, 0.456, 0.406, 0.5], dtype=jnp.float32)
    std = jnp.array([0.229, 0.224, 0.225, 0.25], dtype=jnp.float32)

    out = denormalize(x, mean, std)
    out = jax.block_until_ready(out)

    # Reference check against plain JAX.
    ref = x * std[None, :, None, None] + mean[None, :, None, None]
    assert jnp.allclose(out, ref, atol=1e-6), "mismatch vs reference"

    # Extra robustness check: non-128-divisible spatial dims + odd batch*channel
    # (exercises the cdiv edge-masking path that replaced the full-extent fallback).
    x2 = jax.random.normal(jax.random.PRNGKey(1), (3, 3, 17, 19), dtype=jnp.float32)
    m2 = jnp.array([0.485, 0.456, 0.406], dtype=jnp.float32)
    s2 = jnp.array([0.229, 0.224, 0.225], dtype=jnp.float32)
    out2 = jax.block_until_ready(denormalize(x2, m2, s2))
    ref2 = x2 * s2[None, :, None, None] + m2[None, :, None, None]
    assert jnp.allclose(out2, ref2, atol=1e-6), "mismatch vs reference (ragged)"

    print("KERNEL_OK")
</pallas_src>

<mosaic_0001>
module attributes {stable_mosaic.version = 11 : i64} {
  func.func @_denorm_kernel(%arg0: i32, %arg1: i32, %arg2: memref<8x256xf32, #tpu.memory_space<vmem>>, %arg3: memref<8x1xf32, #tpu.memory_space<vmem>>, %arg4: memref<8x1xf32, #tpu.memory_space<vmem>>, %arg5: memref<8x256xf32, #tpu.memory_space<vmem>>) attributes {dimension_semantics = [#tpu.dimension_semantics<parallel>, #tpu.dimension_semantics<parallel>], iteration_bounds = array<i64: 1, 1>, scalar_prefetch = 0 : i64, scratch_operands = 0 : i64, tpu.core_type = #tpu.core_type<tc>, window_params = [{transform_indices = @transform_0, window_bounds = array<i64: 8, 256>}, {transform_indices = @transform_1, window_bounds = array<i64: 8, 1>}, {transform_indices = @transform_2, window_bounds = array<i64: 8, 1>}, {transform_indices = @transform_3, window_bounds = array<i64: 8, 256>}]} {
    %c0 = arith.constant 0 : index
    %c0_0 = arith.constant 0 : index
    %0 = vector.load %arg2[%c0, %c0_0] : memref<8x256xf32, #tpu.memory_space<vmem>>, vector<8x256xf32>
    %c0_1 = arith.constant 0 : index
    %c0_2 = arith.constant 0 : index
    %1 = vector.load %arg3[%c0_1, %c0_2] : memref<8x1xf32, #tpu.memory_space<vmem>>, vector<8x1xf32>
    %2 = vector.broadcast %1 : vector<8x1xf32> to vector<8x256xf32>
    %3 = arith.mulf %0, %2 : vector<8x256xf32>
    %c0_3 = arith.constant 0 : index
    %c0_4 = arith.constant 0 : index
    %4 = vector.load %arg4[%c0_3, %c0_4] : memref<8x1xf32, #tpu.memory_space<vmem>>, vector<8x1xf32>
    %5 = vector.broadcast %4 : vector<8x1xf32> to vector<8x256xf32>
    %6 = arith.addf %3, %5 : vector<8x256xf32>
    %c0_5 = arith.constant 0 : index
    %c0_6 = arith.constant 0 : index
    %7 = vector.load %arg5[%c0_5, %c0_6] : memref<8x256xf32, #tpu.memory_space<vmem>>, vector<8x256xf32>
    tpu.vector_store %arg5[%c0_5, %c0_6], %6 {strides = array<i32>} : memref<8x256xf32, #tpu.memory_space<vmem>>, vector<8x256xf32>,
    return
  }
  func.func @transform_0(%arg0: i32, %arg1: i32) -> (i32, i32) {
    %c0_i32 = arith.constant 0 : i32
    return %arg0, %arg1 : i32, i32
  }
  func.func @transform_1(%arg0: i32, %arg1: i32) -> (i32, i32) {
    %c0_i32 = arith.constant 0 : i32
    %c0_i32_0 = arith.constant 0 : i32
    return %arg0, %c0_i32 : i32, i32
  }
  func.func @transform_2(%arg0: i32, %arg1: i32) -> (i32, i32) {
    %c0_i32 = arith.constant 0 : i32
    %c0_i32_0 = arith.constant 0 : i32
    return %arg0, %c0_i32 : i32, i32
  }
  func.func @transform_3(%arg0: i32, %arg1: i32) -> (i32, i32) {
    %c0_i32 = arith.constant 0 : i32
    return %arg0, %arg1 : i32, i32
  }
}

</mosaic_0001>

<bundles_post_ra>
// kernel: tpu_custom_call.1
= control target key start
LH: loop header
LB: loop body
LE: loop exit
PB: predicated region body
PF: predicated region fallthrough
CT: control target
= control target key end

     0   :  { %s117_s0 = inlined_call_operand.vmem [shape: f32[8,256], index: 0, kind: input, shape index: {}]   ;;  %s118_s1 = inlined_call_operand.vmem [shape: f32[8,1], index: 1, kind: input, shape index: {}]   ;;  %s119_s2 = inlined_call_operand.vmem [shape: f32[8,1], index: 2, kind: input, shape index: {}]   ;;  %s120_s3 = inlined_call_operand.hbm [shape: f32[8,256], index: 3, kind: output, shape index: {}]  }
   0x1   :  { %v17_v0 = vld [vmem:[%s118_s1] sm:$0xff] }
   0x2   :  { %8 = vsyncpa [#allocation3], 0  ;;  %v80_v1 = vmov 0   ;;  %v25_v2 = vld [vmem:[%s119_s2] sm:$0xff]  ;;  %v16_v5 = vld [vmem:[%s117_s0 + $0x8] sm:$0xff]  ;;  %s81_s1 = smov [#allocation2]  }
   0x3   :  { %53 = vset.pattern.permute.xlu0 %v80_v1  ;;  %v15_v4 = vld [vmem:[%s117_s0] sm:$0xff]  ;;  %s40_s20 = sshll.u32 %s81_s1, 4  ;;  %s42_s23 = sshll.u32 %s120_s3, 4  ;;  %s41_s20 = int_to_ptr.vmem [resolvable:$true] %s40_s20  ;;  %s43_s23 = int_to_ptr.hbm [resolvable:$true] %s42_s23 }
   0x4   :  { %20 = vperm.xlu0 %53, %v17_v0  }
   0xc   :  { %28 = vperm.xlu0 %53, %v25_v2  }
  0x76   :  { %v21_v3 = vpop.permute.xlu0 %20 }
  0x77   :  { %v23_v6 = vmul.f32 %v21_v3, %v15_v4  ;;  %v24_v7 = vmul.f32 %v21_v3, %v16_v5 }
  0x7e   :  { %v29_v8 = vpop.permute.xlu0 %28 }
  0x7f   :  { %v31_v9 = vadd.f32 %v29_v8, %v23_v6  ;;  %v32_v10 = vadd.f32 %v29_v8, %v24_v7 }
  0x81   :  { %33 = vst [vmem:[#allocation2] sm:$0xff] %v31_v9 }
  0x82   :  { %34 = vst [vmem:[#allocation2 + $0x8] sm:$0xff] %v32_v10 }
  0x83   :  { %45 = dma.vmem_to_hbm [thread:$0]  %s41_s20, 256, %s43_s23, [#allocation3]  }
  0x84   :  { %78 = dma.done.wait [#allocation3], 256  }
  0x85   :  { %79 = vsyncadd [#allocation3], 4294967040 }
  0x86   :  { %50 = vsyncpa [#allocation3], 1 }

</bundles_post_ra>
